<compile_context>
chip_gen: v7x
topology: tpu7x:2x2x1
jax: 0.10.0
libtpu: 0.0.40
codegen_flags: <defaults>
</compile_context>

<pallas_src>
import jax
import jax.numpy as jnp
import numpy as np
from jax.experimental import pallas as pl
from jax.experimental.pallas import tpu as pltpu


# ------------------------------ Pallas kernel -------------------------------

def _conv1x1_kernel(x_ref, w_ref, b_ref, o_ref):
    # x_ref: (BB, Cin,  TL)   BB batch elements, one lane tile of H*W
    # w_ref: (Cout, Cin)      1x1 conv weight as a plain matrix
    # b_ref: (Cout, 1)        bias
    # o_ref: (BB, Cout, TL)
    w = w_ref[...]
    b = b_ref[...]
    bb = x_ref.shape[0]                 # static block dim -> unrolled loop
    for i in range(bb):
        y = jnp.dot(w, x_ref[i], preferred_element_type=jnp.float32)  # (Cout, TL)
        o_ref[i] = (y + b).astype(o_ref.dtype)


# ------------------------------ tiling planner -------------------------------

def _cdiv(a, b):
    return (a + b - 1) // b


def _round_down(x, m):
    return (x // m) * m


def _vmem_capacity_bytes():
    try:
        info = pltpu.get_tpu_info()
        cap = getattr(info, "vmem_capacity_bytes", None)
        if cap:
            return int(cap)
    except Exception:
        pass
    return 64 << 20  # conservative: v7x per-TensorCore VMEM


def _plan_tiling(B, Cin, Cout, HW, itemsize):
    """Pick (BB, TL) so one grid step moves a few MiB while double-buffered
    input+output blocks stay well inside the smallest generation's VMEM."""
    vmem_cap = _vmem_capacity_bytes()
    # Bytes allowed for the double-buffered in+out pipeline.
    pipeline_budget = min(int(0.4 * vmem_cap), 48 << 20)
    # Each spatial column costs (Cin + Cout) * itemsize, double buffered.
    col_budget = max(pipeline_budget // (2 * (Cin + Cout) * itemsize), 128)

    if HW <= col_budget:
        # Whole spatial extent fits in one lane tile (full-extent block is
        # allowed even when HW is not 128-aligned); fold batch elements in.
        TL = HW
        n_tiles = 1
        BB = int(np.clip(col_budget // max(TL, 1), 1, B))
    else:
        # Tile the spatial axis with a 128-multiple tile; the cdiv grid masks
        # the ragged last block, so TL need not divide HW and HW need not be
        # 128-aligned.
        TL = min(_round_down(col_budget, 128), max(_round_down(HW, 128), 128))
        TL = max(TL, 128)
        n_tiles = _cdiv(HW, TL)
        BB = 1

    n_bblocks = _cdiv(B, BB)
    return BB, TL, n_bblocks, n_tiles, vmem_cap


# ------------------------------ host wrapper --------------------------------

def outconv_forward(x_nchw, weight_oihw, bias_o):
    B, Cin, H, W = x_nchw.shape
    Cout = weight_oihw.shape[0]
    HW = H * W
    itemsize = np.dtype(x_nchw.dtype).itemsize

    BB, TL, n_bblocks, n_tiles, vmem_cap = _plan_tiling(B, Cin, Cout, HW, itemsize)

    x3 = x_nchw.reshape(B, Cin, HW)        # free view (NCHW is contiguous here)
    w2 = weight_oihw.reshape(Cout, Cin)    # (Cout, Cin, 1, 1) -> (Cout, Cin)
    b2 = bias_o.reshape(Cout, 1)

    # Put the longer grid axis first so v7x's two TensorCores both get work
    # even when one axis is trivial (e.g. B=1 at inference).
    spatial_major = n_tiles >= n_bblocks
    if spatial_major:
        grid = (n_tiles, n_bblocks)
        xo_map = lambda t, b: (b, 0, t)
    else:
        grid = (n_bblocks, n_tiles)
        xo_map = lambda b, t: (b, 0, t)
    wb_map = lambda i, j: (0, 0)

    # Scoped-VMEM limit: double-buffered in/out blocks + weight/bias + headroom
    # (v5e's default scoped limit is only 16 MiB; keep well under v7x physical).
    in_bytes = BB * Cin * TL * itemsize
    out_bytes = BB * Cout * TL * itemsize
    fixed = (Cout * Cin + Cout) * itemsize
    needed = 2 * (in_bytes + out_bytes) + fixed
    vmem_limit = int(min(max(2 * needed + (4 << 20), 32 << 20), 0.9 * vmem_cap))

    out = pl.pallas_call(
        _conv1x1_kernel,
        out_shape=jax.ShapeDtypeStruct((B, Cout, HW), x_nchw.dtype),
        grid_spec=pltpu.PrefetchScalarGridSpec(
            num_scalar_prefetch=0,
            grid=grid,
            in_specs=[
                pl.BlockSpec((BB, Cin, TL), xo_map),
                pl.BlockSpec((Cout, Cin), wb_map),
                pl.BlockSpec((Cout, 1), wb_map),
            ],
            out_specs=pl.BlockSpec((BB, Cout, TL), xo_map),
        ),
        compiler_params=pltpu.CompilerParams(
            dimension_semantics=("parallel", "parallel"),
            vmem_limit_bytes=vmem_limit),
    )(x3, w2, b2)
    return out.reshape(B, Cout, H, W)


@jax.jit
def outconv_jit(x_nchw, weight_oihw, bias_o):
    return outconv_forward(x_nchw, weight_oihw, bias_o)


def init_outconv_params(key, in_channels, out_channels):
    kw, kb = jax.random.split(key)
    # PyTorch Conv2d weight layout: (Cout, Cin, 1, 1); bias: (Cout,)
    fan_in = in_channels  # kernel_size = 1
    bound = 1.0 / np.sqrt(fan_in)
    w = jax.random.uniform(kw, (out_channels, in_channels, 1, 1),
                           jnp.float32, -bound, bound)
    b = jax.random.uniform(kb, (out_channels,), jnp.float32, -bound, bound)
    return {"w": w, "b": b}


# ----------------------------- pure-JAX reference ----------------------------

def ref_outconv(x_nchw, weight_oihw, bias_o):
    y = jax.lax.conv_general_dilated(
        x_nchw, weight_oihw, window_strides=(1, 1), padding="VALID",
        dimension_numbers=("NCHW", "OIHW", "NCHW"))
    return y + bias_o.reshape(1, -1, 1, 1)


# ----------------------------------- main ------------------------------------

if __name__ == "__main__":
    B, C_IN, C_OUT, H, W = 2, 4, 8, 16, 16

    key = jax.random.PRNGKey(0)
    kx, kp = jax.random.split(key)
    x = jax.random.normal(kx, (B, C_IN, H, W), jnp.float32)
    params = init_outconv_params(kp, C_IN, C_OUT)

    out = outconv_jit(x, params["w"], params["b"])
    out = jax.block_until_ready(out)

    assert out.shape == (B, C_OUT, H, W), out.shape
    ref = jax.block_until_ready(ref_outconv(x, params["w"], params["b"]))
    np.testing.assert_allclose(np.asarray(out), np.asarray(ref),
                               rtol=1e-5, atol=1e-5)

    print("KERNEL_OK")
</pallas_src>

<mosaic_0001>
module attributes {stable_mosaic.version = 11 : i64} {
  func.func @_conv1x1_kernel(%arg0: i32, %arg1: i32, %arg2: memref<2x4x256xf32, #tpu.memory_space<vmem>>, %arg3: memref<8x4xf32, #tpu.memory_space<vmem>>, %arg4: memref<8x1xf32, #tpu.memory_space<vmem>>, %arg5: memref<2x8x256xf32, #tpu.memory_space<vmem>>) attributes {dimension_semantics = [#tpu.dimension_semantics<parallel>, #tpu.dimension_semantics<parallel>], iteration_bounds = array<i64: 1, 1>, scalar_prefetch = 0 : i64, scratch_operands = 0 : i64, tpu.core_type = #tpu.core_type<tc>, window_params = [{transform_indices = @transform_0, window_bounds = array<i64: 2, 4, 256>}, {pipeline_mode = #tpu.pipeline_mode<synchronous>, transform_indices = @transform_1, window_bounds = array<i64: 8, 4>}, {pipeline_mode = #tpu.pipeline_mode<synchronous>, transform_indices = @transform_2, window_bounds = array<i64: 8, 1>}, {transform_indices = @transform_3, window_bounds = array<i64: 2, 8, 256>}]} {
    %c0 = arith.constant 0 : index
    %c0_0 = arith.constant 0 : index
    %0 = vector.load %arg3[%c0, %c0_0] : memref<8x4xf32, #tpu.memory_space<vmem>>, vector<8x4xf32>
    %c0_1 = arith.constant 0 : index
    %c0_2 = arith.constant 0 : index
    %1 = vector.load %arg4[%c0_1, %c0_2] : memref<8x1xf32, #tpu.memory_space<vmem>>, vector<8x1xf32>
    %c0_3 = arith.constant 0 : index
    %c0_4 = arith.constant 0 : index
    %c0_5 = arith.constant 0 : index
    %2 = vector.load %arg2[%c0_3, %c0_4, %c0_5] : memref<2x4x256xf32, #tpu.memory_space<vmem>>, vector<1x4x256xf32>
    %3 = vector.shape_cast %2 : vector<1x4x256xf32> to vector<4x256xf32>
    %cst = arith.constant dense<0.000000e+00> : vector<8x256xf32>
    %4 = tpu.matmul %0, %3, %cst {dimension_numbers = #tpu.dot_dimension_numbers<[1], [0], [0], [1], [0, 0, 1, 1], [], []>} : vector<8x4xf32>, vector<4x256xf32>, vector<8x256xf32> -> vector<8x256xf32>
    %5 = vector.broadcast %1 : vector<8x1xf32> to vector<8x256xf32>
    %6 = arith.addf %4, %5 : vector<8x256xf32>
    %c0_6 = arith.constant 0 : index
    %c0_7 = arith.constant 0 : index
    %c0_8 = arith.constant 0 : index
    %7 = vector.load %arg5[%c0_6, %c0_7, %c0_8] : memref<2x8x256xf32, #tpu.memory_space<vmem>>, vector<1x8x256xf32>
    %8 = vector.shape_cast %7 : vector<1x8x256xf32> to vector<8x256xf32>
    %9 = vector.shape_cast %6 : vector<8x256xf32> to vector<1x8x256xf32>
    tpu.vector_store %arg5[%c0_6, %c0_7, %c0_8], %9 {strides = array<i32>} : memref<2x8x256xf32, #tpu.memory_space<vmem>>, vector<1x8x256xf32>,
    %c1 = arith.constant 1 : index
    %c0_9 = arith.constant 0 : index
    %c0_10 = arith.constant 0 : index
    %10 = vector.load %arg2[%c1, %c0_9, %c0_10] : memref<2x4x256xf32, #tpu.memory_space<vmem>>, vector<1x4x256xf32>
    %11 = vector.shape_cast %10 : vector<1x4x256xf32> to vector<4x256xf32>
    %cst_11 = arith.constant dense<0.000000e+00> : vector<8x256xf32>
    %12 = tpu.matmul %0, %11, %cst_11 {dimension_numbers = #tpu.dot_dimension_numbers<[1], [0], [0], [1], [0, 0, 1, 1], [], []>} : vector<8x4xf32>, vector<4x256xf32>, vector<8x256xf32> -> vector<8x256xf32>
    %13 = vector.broadcast %1 : vector<8x1xf32> to vector<8x256xf32>
    %14 = arith.addf %12, %13 : vector<8x256xf32>
    %c1_12 = arith.constant 1 : index
    %c0_13 = arith.constant 0 : index
    %c0_14 = arith.constant 0 : index
    %15 = vector.load %arg5[%c1_12, %c0_13, %c0_14] : memref<2x8x256xf32, #tpu.memory_space<vmem>>, vector<1x8x256xf32>
    %16 = vector.shape_cast %15 : vector<1x8x256xf32> to vector<8x256xf32>
    %17 = vector.shape_cast %14 : vector<8x256xf32> to vector<1x8x256xf32>
    tpu.vector_store %arg5[%c1_12, %c0_13, %c0_14], %17 {strides = array<i32>} : memref<2x8x256xf32, #tpu.memory_space<vmem>>, vector<1x8x256xf32>,
    return
  }
  func.func @transform_0(%arg0: i32, %arg1: i32) -> (i32, i32, i32) {
    %c0_i32 = arith.constant 0 : i32
    %c0_i32_0 = arith.constant 0 : i32
    return %arg1, %c0_i32, %arg0 : i32, i32, i32
  }
  func.func @transform_1(%arg0: i32, %arg1: i32) -> (i32, i32) {
    %c0_i32 = arith.constant 0 : i32
    %c0_i32_0 = arith.constant 0 : i32
    %c0_i32_1 = arith.constant 0 : i32
    return %c0_i32, %c0_i32_0 : i32, i32
  }
  func.func @transform_2(%arg0: i32, %arg1: i32) -> (i32, i32) {
    %c0_i32 = arith.constant 0 : i32
    %c0_i32_0 = arith.constant 0 : i32
    %c0_i32_1 = arith.constant 0 : i32
    return %c0_i32, %c0_i32_0 : i32, i32
  }
  func.func @transform_3(%arg0: i32, %arg1: i32) -> (i32, i32, i32) {
    %c0_i32 = arith.constant 0 : i32
    %c0_i32_0 = arith.constant 0 : i32
    return %arg1, %c0_i32, %arg0 : i32, i32, i32
  }
}

</mosaic_0001>

<bundles_post_ra>
// kernel: outconv_jit.1
= control target key start
LH: loop header
LB: loop body
LE: loop exit
PB: predicated region body
PF: predicated region fallthrough
CT: control target
= control target key end

     0   :  { %vm28_vm0 = vcmask 1043456   ;;  %v206_v2 = vmov 0.0   ;;  %v207_v5 = vmov 0   ;;  %vm24_vm1 = vcmask 31744   ;;  %s256_s0 = inlined_call_operand.vmem [shape: f32[2,4,256], index: 0, kind: input, shape index: {}]   ;;  %s257_s1 = inlined_call_operand.vmem [shape: f32[8,4], index: 1, kind: input, shape index: {}]   ;;  %s258_s2 = inlined_call_operand.vmem [shape: f32[8,1], index: 2, kind: input, shape index: {}]   ;;  %s259_s3 = inlined_call_operand.vmem [shape: f32[2,8,256], index: 3, kind: output, shape index: {}]  }
   0x1   :  { %v16_v0 = vld [vmem:[%s256_s0] sm:$0xff]  ;;  %v195_v1 = vld [vmem:[%s256_s0 + $0x8] sm:$0xff]  ;;  %97 = vmatprep.mubr.f32.mxu0 %v206_v2  ;;  %178 = vmatprep.mubr.f32.mxu1 %v206_v2 }
   0x2   :  { %v23_v3 = vcombine.high %v16_v0, %v16_v0  ;;  %v109_v4 = vcombine.high %v195_v1, %v195_v1  ;;  %203 = vset.pattern.permute.xlu0 %v207_v5  ;;  %v15_v6 = vld [vmem:[%s258_s2] sm:$0xff] }
   0x3   :  { %v14_v7 = vld [vmem:[%s257_s1] sm:$0xff]  ;;  %19 = vperm.xlu0 %203, %v15_v6  }
   0x4   :  { %192 = vmatprep.subr.msk.mxu0 %vm28_vm0, %v23_v3  ;;  %196 = vmatprep.subr.msk.mxu1 %vm28_vm0, %v109_v4 }
   0x5   :  { %193 = vmatpush1.msk.msra.mxu0 %vm28_vm0, %v16_v0  ;;  %197 = vmatpush1.msk.msra.mxu1 %vm28_vm0, %v195_v1 }
   0x6   :  { %194 = vmatmul.mubr.msk.f32.vlgmr.msra.gmra.mrb[0].mxu0 %vm24_vm1, %v14_v7  ;;  %198 = vmatmul.mubr.msk.f32.vlgmr.msra.gmra.mrb[0].mxu1 %vm24_vm1, %v14_v7 }
  0x82   :  { %v20_v8 = vpop.permute.xlu0 %19 }
  0xd9   :  { %v99_v9 = vpop.f32.mrb[0].mxu0  ;;  %v180_v10 = vpop.f32.mrb[0].mxu1 }
  0xda   :  { %v100_v11 = vadd.f32 %v99_v9, %v20_v8  ;;  %v181_v12 = vadd.f32 %v180_v10, %v20_v8  ;;  %v101_v13 = vpop.f32.mrb[1].mxu0  ;;  %v182_v14 = vpop.f32.mrb[1].mxu1 }
  0xdb   :  { %v102_v15 = vadd.f32 %v101_v13, %v20_v8  ;;  %v183_v16 = vadd.f32 %v182_v14, %v20_v8 }
  0xdc   :  { %104 = vst [vmem:[%s259_s3] sm:$0xff] %v100_v11  ;;  %199 = vst [vmem:[%s259_s3 + $0x10] sm:$0xff] %v181_v12 }
  0xdd   :  { %105 = vst [vmem:[%s259_s3 + $0x8] sm:$0xff] %v102_v15  ;;  %200 = vst [vmem:[%s259_s3 + $0x18] sm:$0xff] %v183_v16 }

</bundles_post_ra>
